<compile_context>
chip_gen: v6e
topology: v6e:2x2x1
jax: 0.10.0
libtpu: 0.0.40
codegen_flags: <defaults>
</compile_context>

<pallas_src>
import functools

import jax
import jax.numpy as jnp
from jax.experimental import pallas as pl
from jax.experimental.pallas import tpu as pltpu


# ---------------------------------------------------------------------------
# Fused kernel: Nb batch elements per grid step, everything stays in VMEM,
# every access is lane-dense (last dim = W*C = multiple of 128 at these shapes).
# ---------------------------------------------------------------------------
def _basic_block_kernel(x_ref, w1_ref, b1_ref, w2_ref, b2_ref, out_ref, *, H, M):
    """Fused BasicBlock forward for Nb batch elements (M = Nb * H rows).

    x_ref:   (M, W*Cin)        lane-packed NHWC input rows
    w1_ref:  (3, W*Cin, W*Cmid) banded conv1 weights (BN1 scale folded in)
    b1_ref:  (1, W*Cmid)       lane-packed BN1 bias
    w2_ref:  (3, W*Cmid, W*Cout) banded conv2 weights (BN2 scale folded in)
    b2_ref:  (1, W*Cout)       lane-packed BN2 bias
    out_ref: (M, W*Cout)       lane-packed NHWC output rows
    """
    x = x_ref[...].astype(jnp.float32)                      # (M, W*Cin)

    def conv3x3_banded(a, w_ref):
        # a: (M, WCi).  Row shifts give the dy = 0 / 2 taps; the per-element
        # top/bottom zero padding is a row mask (also kills the roll wrap and
        # cross-element leakage when Nb > 1).  dx taps live inside the band.
        rows = jax.lax.broadcasted_iota(jnp.int32, a.shape, 0) % H
        up = jnp.where(rows == 0, 0.0, pltpu.roll(a, 1, axis=0))       # row h-1
        dn = jnp.where(rows == H - 1, 0.0, pltpu.roll(a, M - 1, axis=0))  # row h+1
        y = jnp.dot(up, w1 := w_ref[0], preferred_element_type=jnp.float32)
        del w1
        y = y + jnp.dot(a, w_ref[1], preferred_element_type=jnp.float32)
        y = y + jnp.dot(dn, w_ref[2], preferred_element_type=jnp.float32)
        return y

    # conv1 + folded BN1 + ReLU  (stays in VMEM / vregs)
    y = jnp.maximum(conv3x3_banded(x, w1_ref) + b1_ref[...], 0.0)
    # conv2 + folded BN2 + identity residual + ReLU
    z = conv3x3_banded(y, w2_ref) + b2_ref[...]
    out_ref[...] = jnp.maximum(z + x, 0.0).astype(out_ref.dtype)   # lane-dense


# ---------------------------------------------------------------------------
# Wrapper: PyTorch-style NCHW input / OIHW weights in, NCHW out.
# ---------------------------------------------------------------------------
def _fold_bn(gamma, beta, mean, var, eps=1e-5):
    scale = gamma / jnp.sqrt(var + eps)
    bias = beta - mean * scale
    return scale, bias


def _make_banded_weight(w_oihw, scale, Wdim):
    """OIHW 3x3 conv weight -> (3, W*Cin, W*Cout) banded matmul weights.

    band[dy][w_in*Cin + cin, w_out*Cout + cout] =
        scale[cout] * w[cout, cin, dy, dx]  where  w_in = w_out + dx - 1,
    and zero elsewhere (which realizes the W-direction zero padding).
    """
    Cout, Cin, _, _ = w_oihw.shape
    w = w_oihw.astype(jnp.float32) * scale.astype(jnp.float32)[:, None, None, None]
    wT = jnp.transpose(w, (2, 3, 1, 0))                    # (dy, dx, cin, cout)
    bands = []
    for dy in range(3):
        acc = jnp.zeros((Wdim, Cin, Wdim, Cout), jnp.float32)
        for dx in range(3):
            # E[w_in, w_out] = 1  iff  w_in == w_out + dx - 1
            e = jnp.eye(Wdim, Wdim, k=1 - dx, dtype=jnp.float32)
            acc = acc + jnp.einsum("ab,cd->acbd", e, wT[dy, dx])
        bands.append(acc.reshape(Wdim * Cin, Wdim * Cout))
    return jnp.stack(bands, axis=0)                        # (3, W*Cin, W*Cout)


def _pick_block_batch(N):
    # Amortize per-grid-step overhead, but keep >= 2 grid steps so a v7x
    # megacore ("parallel" batch axis) gets work on both TensorCores.
    for nb in (8, 4, 2, 1):
        if N % nb == 0 and (N // nb) >= 2:
            return nb
    return 1


def basic_block_forward(x_nchw, params, *, block_batch=None):
    N, Cin, H, W = x_nchw.shape
    w1, w2 = params["w1"], params["w2"]                    # OIHW (O, I, 3, 3)
    Cmid, Cout = w1.shape[0], w2.shape[0]
    assert w1.shape[1] == Cin and w2.shape[1] == Cmid
    assert Cin == Cout, "no-downsample BasicBlock requires Cin == Cout"
    # Layout note: the kernel is fastest when W*C is a multiple of 128 (lane
    # dense) and H is a multiple of 8; other shapes still compile, just with
    # masked layouts.

    s1, b1 = _fold_bn(params["g1"], params["beta1"], params["m1"], params["v1"])
    s2, b2 = _fold_bn(params["g2"], params["beta2"], params["m2"], params["v2"])

    WCin, WCmid, WCout = W * Cin, W * Cmid, W * Cout

    # BN scale folded into the banded conv weights (exact for inference BN).
    w1_band = _make_banded_weight(w1, s1, W)               # (3, WCin, WCmid)
    w2_band = _make_banded_weight(w2, s2, W)               # (3, WCmid, WCout)
    b1_row = jnp.tile(b1.astype(jnp.float32), W).reshape(1, WCmid)
    b2_row = jnp.tile(b2.astype(jnp.float32), W).reshape(1, WCout)

    # Layout glue kept outside the kernel: NCHW -> lane-packed rows (N*H, W*C).
    x2d = jnp.transpose(x_nchw, (0, 2, 3, 1)).reshape(N * H, WCin)

    Nb = block_batch if block_batch is not None else _pick_block_batch(N)
    assert N % Nb == 0
    M = Nb * H

    kernel = functools.partial(_basic_block_kernel, H=H, M=M)

    out2d = pl.pallas_call(
        kernel,
        out_shape=jax.ShapeDtypeStruct((N * H, WCout), x_nchw.dtype),
        grid=(N // Nb,),
        in_specs=[
            pl.BlockSpec((M, WCin), lambda i: (i, 0)),
            pl.BlockSpec((3, WCin, WCmid), lambda i: (0, 0, 0)),
            pl.BlockSpec((1, WCmid), lambda i: (0, 0)),
            pl.BlockSpec((3, WCmid, WCout), lambda i: (0, 0, 0)),
            pl.BlockSpec((1, WCout), lambda i: (0, 0)),
        ],
        out_specs=pl.BlockSpec((M, WCout), lambda i: (i, 0)),
        compiler_params=pltpu.CompilerParams(
            dimension_semantics=("parallel",)),
    )(x2d, w1_band, b1_row, w2_band, b2_row)

    out_nhwc = out2d.reshape(N, H, W, Cout)
    return jnp.transpose(out_nhwc, (0, 3, 1, 2))           # NHWC -> NCHW


# ---------------------------------------------------------------------------
# Pure-JAX reference (correctness check)
# ---------------------------------------------------------------------------
def _ref_forward(x_nchw, params):
    dn = ("NCHW", "OIHW", "NCHW")

    def conv(inp, w):
        return jax.lax.conv_general_dilated(
            inp, w, window_strides=(1, 1), padding="SAME",
            dimension_numbers=dn)

    def bn(y, g, beta, m, v):
        s, b = _fold_bn(g, beta, m, v)
        return y * s[None, :, None, None] + b[None, :, None, None]

    out = jnp.maximum(
        bn(conv(x_nchw, params["w1"]),
           params["g1"], params["beta1"], params["m1"], params["v1"]), 0.0)
    out = jnp.maximum(
        bn(conv(out, params["w2"]),
           params["g2"], params["beta2"], params["m2"], params["v2"]) + x_nchw,
        0.0)
    return out


# ---------------------------------------------------------------------------
if __name__ == "__main__":
    # BasicBlock(inplanes=planes=8, stride=1, downsample=None)
    # C=8, W=16 => W*C = 128 lanes (lane-dense loads/stores/matmul output).
    N, C, H, W = 2, 8, 16, 16
    key = jax.random.PRNGKey(0)
    k = jax.random.split(key, 11)

    x = jax.random.normal(k[0], (N, C, H, W), jnp.float32)

    params = dict(
        w1=0.1 * jax.random.normal(k[1], (C, C, 3, 3), jnp.float32),   # OIHW
        w2=0.1 * jax.random.normal(k[2], (C, C, 3, 3), jnp.float32),   # OIHW
        g1=1.0 + 0.1 * jax.random.normal(k[3], (C,), jnp.float32),
        beta1=0.05 * jax.random.normal(k[4], (C,), jnp.float32),
        m1=0.1 * jax.random.normal(k[5], (C,), jnp.float32),
        v1=1.0 + 0.1 * jax.random.uniform(k[6], (C,), jnp.float32),
        g2=1.0 + 0.1 * jax.random.normal(k[7], (C,), jnp.float32),
        beta2=0.05 * jax.random.normal(k[8], (C,), jnp.float32),
        m2=0.1 * jax.random.normal(k[9], (C,), jnp.float32),
        v2=1.0 + 0.1 * jax.random.uniform(k[10], (C,), jnp.float32),
    )

    out = jax.jit(basic_block_forward)(x, params)
    out = jax.block_until_ready(out)

    ref = _ref_forward(x, params)
    assert out.shape == (N, C, H, W)
    err = jnp.max(jnp.abs(out - ref))
    assert jnp.allclose(out, ref, atol=1e-4, rtol=1e-4), f"max err {err}"

    print("KERNEL_OK")
</pallas_src>

<mosaic_0001>
module attributes {stable_mosaic.version = 11 : i64} {
  func.func @_basic_block_kernel(%arg0: i32, %arg1: memref<16x128xf32, #tpu.memory_space<vmem>>, %arg2: memref<3x128x128xf32, #tpu.memory_space<vmem>>, %arg3: memref<1x128xf32, #tpu.memory_space<vmem>>, %arg4: memref<3x128x128xf32, #tpu.memory_space<vmem>>, %arg5: memref<1x128xf32, #tpu.memory_space<vmem>>, %arg6: memref<16x128xf32, #tpu.memory_space<vmem>>) attributes {dimension_semantics = [#tpu.dimension_semantics<parallel>], iteration_bounds = array<i64: 2>, scalar_prefetch = 0 : i64, scratch_operands = 0 : i64, tpu.core_type = #tpu.core_type<tc>, window_params = [{transform_indices = @transform_0, window_bounds = array<i64: 16, 128>}, {pipeline_mode = #tpu.pipeline_mode<synchronous>, transform_indices = @transform_1, window_bounds = array<i64: 3, 128, 128>}, {pipeline_mode = #tpu.pipeline_mode<synchronous>, transform_indices = @transform_2, window_bounds = array<i64: 1, 128>}, {pipeline_mode = #tpu.pipeline_mode<synchronous>, transform_indices = @transform_3, window_bounds = array<i64: 3, 128, 128>}, {pipeline_mode = #tpu.pipeline_mode<synchronous>, transform_indices = @transform_4, window_bounds = array<i64: 1, 128>}, {transform_indices = @transform_5, window_bounds = array<i64: 16, 128>}]} {
    %c0 = arith.constant 0 : index
    %c0_0 = arith.constant 0 : index
    %0 = vector.load %arg1[%c0, %c0_0] : memref<16x128xf32, #tpu.memory_space<vmem>>, vector<16x128xf32>
    %1 = tpu.iota {dimensions = array<i32: 0>} : vector<16x128xi32>
    %c16_i32 = arith.constant 16 : i32
    %c0_i32 = arith.constant 0 : i32
    %2 = arith.cmpi eq, %c16_i32, %c0_i32 : i32
    %c1_i32 = arith.constant 1 : i32
    %3 = arith.select %2, %c1_i32, %c16_i32 : i32
    %4 = vector.broadcast %3 : i32 to vector<16x128xi32>
    %5 = arith.remsi %1, %4 : vector<16x128xi32>
    %c0_i32_1 = arith.constant 0 : i32
    %6 = vector.broadcast %c0_i32_1 : i32 to vector<16x128xi32>
    %7 = arith.cmpi ne, %5, %6 : vector<16x128xi32>
    %c0_i32_2 = arith.constant 0 : i32
    %8 = vector.broadcast %c0_i32_2 : i32 to vector<16x128xi32>
    %9 = arith.cmpi slt, %5, %8 : vector<16x128xi32>
    %c0_i32_3 = arith.constant 0 : i32
    %10 = arith.cmpi slt, %3, %c0_i32_3 : i32
    %11 = vector.broadcast %10 : i1 to vector<16x128xi1>
    %12 = vector.broadcast %11 : vector<16x128xi1> to vector<16x128xi1>
    %13 = arith.xori %9, %12 : vector<16x128xi1>
    %14 = arith.andi %13, %7 : vector<16x128xi1>
    %15 = vector.broadcast %3 : i32 to vector<16x128xi32>
    %16 = arith.addi %5, %15 : vector<16x128xi32>
    %17 = arith.select %14, %16, %5 : vector<16x128xi1>, vector<16x128xi32>
    %c0_i32_4 = arith.constant 0 : i32
    %18 = vector.broadcast %c0_i32_4 : i32 to vector<16x128xi32>
    %19 = arith.cmpi eq, %17, %18 : vector<16x128xi32>
    %c1_i32_5 = arith.constant 1 : i32
    %20 = tpu.dynamic_rotate %0 by %c1_i32_5 dim 0 : vector<16x128xf32>, i32 -> vector<16x128xf32>
    %cst = arith.constant 0.000000e+00 : f32
    %21 = vector.broadcast %cst : f32 to vector<16x128xf32>
    %22 = arith.select %19, %21, %20 : vector<16x128xi1>, vector<16x128xf32>
    %c15_i32 = arith.constant 15 : i32
    %23 = vector.broadcast %c15_i32 : i32 to vector<16x128xi32>
    %24 = arith.cmpi eq, %17, %23 : vector<16x128xi32>
    %c15_i32_6 = arith.constant 15 : i32
    %25 = tpu.dynamic_rotate %0 by %c15_i32_6 dim 0 : vector<16x128xf32>, i32 -> vector<16x128xf32>
    %cst_7 = arith.constant 0.000000e+00 : f32
    %26 = vector.broadcast %cst_7 : f32 to vector<16x128xf32>
    %27 = arith.select %24, %26, %25 : vector<16x128xi1>, vector<16x128xf32>
    %c0_8 = arith.constant 0 : index
    %c0_9 = arith.constant 0 : index
    %c0_10 = arith.constant 0 : index
    %28 = vector.load %arg2[%c0_8, %c0_9, %c0_10] : memref<3x128x128xf32, #tpu.memory_space<vmem>>, vector<1x128x128xf32>
    %29 = vector.shape_cast %28 : vector<1x128x128xf32> to vector<128x128xf32>
    %cst_11 = arith.constant dense<0.000000e+00> : vector<16x128xf32>
    %30 = tpu.matmul %22, %29, %cst_11 {dimension_numbers = #tpu.dot_dimension_numbers<[1], [0], [0], [1], [0, 0, 1, 1], [], []>} : vector<16x128xf32>, vector<128x128xf32>, vector<16x128xf32> -> vector<16x128xf32>
    %c1 = arith.constant 1 : index
    %c0_12 = arith.constant 0 : index
    %c0_13 = arith.constant 0 : index
    %31 = vector.load %arg2[%c1, %c0_12, %c0_13] : memref<3x128x128xf32, #tpu.memory_space<vmem>>, vector<1x128x128xf32>
    %32 = vector.shape_cast %31 : vector<1x128x128xf32> to vector<128x128xf32>
    %cst_14 = arith.constant dense<0.000000e+00> : vector<16x128xf32>
    %33 = tpu.matmul %0, %32, %cst_14 {dimension_numbers = #tpu.dot_dimension_numbers<[1], [0], [0], [1], [0, 0, 1, 1], [], []>} : vector<16x128xf32>, vector<128x128xf32>, vector<16x128xf32> -> vector<16x128xf32>
    %34 = arith.addf %30, %33 : vector<16x128xf32>
    %c2 = arith.constant 2 : index
    %c0_15 = arith.constant 0 : index
    %c0_16 = arith.constant 0 : index
    %35 = vector.load %arg2[%c2, %c0_15, %c0_16] : memref<3x128x128xf32, #tpu.memory_space<vmem>>, vector<1x128x128xf32>
    %36 = vector.shape_cast %35 : vector<1x128x128xf32> to vector<128x128xf32>
    %cst_17 = arith.constant dense<0.000000e+00> : vector<16x128xf32>
    %37 = tpu.matmul %27, %36, %cst_17 {dimension_numbers = #tpu.dot_dimension_numbers<[1], [0], [0], [1], [0, 0, 1, 1], [], []>} : vector<16x128xf32>, vector<128x128xf32>, vector<16x128xf32> -> vector<16x128xf32>
    %38 = arith.addf %34, %37 : vector<16x128xf32>
    %c0_18 = arith.constant 0 : index
    %c0_19 = arith.constant 0 : index
    %39 = vector.load %arg3[%c0_18, %c0_19] : memref<1x128xf32, #tpu.memory_space<vmem>>, vector<1x128xf32>
    %40 = vector.broadcast %39 : vector<1x128xf32> to vector<16x128xf32>
    %41 = arith.addf %38, %40 : vector<16x128xf32>
    %cst_20 = arith.constant 0.000000e+00 : f32
    %42 = vector.broadcast %cst_20 : f32 to vector<16x128xf32>
    %43 = arith.maximumf %41, %42 : vector<16x128xf32>
    %44 = tpu.iota {dimensions = array<i32: 0>} : vector<16x128xi32>
    %c16_i32_21 = arith.constant 16 : i32
    %c0_i32_22 = arith.constant 0 : i32
    %45 = arith.cmpi eq, %c16_i32_21, %c0_i32_22 : i32
    %c1_i32_23 = arith.constant 1 : i32
    %46 = arith.select %45, %c1_i32_23, %c16_i32_21 : i32
    %47 = vector.broadcast %46 : i32 to vector<16x128xi32>
    %48 = arith.remsi %44, %47 : vector<16x128xi32>
    %c0_i32_24 = arith.constant 0 : i32
    %49 = vector.broadcast %c0_i32_24 : i32 to vector<16x128xi32>
    %50 = arith.cmpi ne, %48, %49 : vector<16x128xi32>
    %c0_i32_25 = arith.constant 0 : i32
    %51 = vector.broadcast %c0_i32_25 : i32 to vector<16x128xi32>
    %52 = arith.cmpi slt, %48, %51 : vector<16x128xi32>
    %c0_i32_26 = arith.constant 0 : i32
    %53 = arith.cmpi slt, %46, %c0_i32_26 : i32
    %54 = vector.broadcast %53 : i1 to vector<16x128xi1>
    %55 = vector.broadcast %54 : vector<16x128xi1> to vector<16x128xi1>
    %56 = arith.xori %52, %55 : vector<16x128xi1>
    %57 = arith.andi %56, %50 : vector<16x128xi1>
    %58 = vector.broadcast %46 : i32 to vector<16x128xi32>
    %59 = arith.addi %48, %58 : vector<16x128xi32>
    %60 = arith.select %57, %59, %48 : vector<16x128xi1>, vector<16x128xi32>
    %c0_i32_27 = arith.constant 0 : i32
    %61 = vector.broadcast %c0_i32_27 : i32 to vector<16x128xi32>
    %62 = arith.cmpi eq, %60, %61 : vector<16x128xi32>
    %c1_i32_28 = arith.constant 1 : i32
    %63 = tpu.dynamic_rotate %43 by %c1_i32_28 dim 0 : vector<16x128xf32>, i32 -> vector<16x128xf32>
    %cst_29 = arith.constant 0.000000e+00 : f32
    %64 = vector.broadcast %cst_29 : f32 to vector<16x128xf32>
    %65 = arith.select %62, %64, %63 : vector<16x128xi1>, vector<16x128xf32>
    %c15_i32_30 = arith.constant 15 : i32
    %66 = vector.broadcast %c15_i32_30 : i32 to vector<16x128xi32>
    %67 = arith.cmpi eq, %60, %66 : vector<16x128xi32>
    %c15_i32_31 = arith.constant 15 : i32
    %68 = tpu.dynamic_rotate %43 by %c15_i32_31 dim 0 : vector<16x128xf32>, i32 -> vector<16x128xf32>
    %cst_32 = arith.constant 0.000000e+00 : f32
    %69 = vector.broadcast %cst_32 : f32 to vector<16x128xf32>
    %70 = arith.select %67, %69, %68 : vector<16x128xi1>, vector<16x128xf32>
    %c0_33 = arith.constant 0 : index
    %c0_34 = arith.constant 0 : index
    %c0_35 = arith.constant 0 : index
    %71 = vector.load %arg4[%c0_33, %c0_34, %c0_35] : memref<3x128x128xf32, #tpu.memory_space<vmem>>, vector<1x128x128xf32>
    %72 = vector.shape_cast %71 : vector<1x128x128xf32> to vector<128x128xf32>
    %cst_36 = arith.constant dense<0.000000e+00> : vector<16x128xf32>
    %73 = tpu.matmul %65, %72, %cst_36 {dimension_numbers = #tpu.dot_dimension_numbers<[1], [0], [0], [1], [0, 0, 1, 1], [], []>} : vector<16x128xf32>, vector<128x128xf32>, vector<16x128xf32> -> vector<16x128xf32>
    %c1_37 = arith.constant 1 : index
    %c0_38 = arith.constant 0 : index
    %c0_39 = arith.constant 0 : index
    %74 = vector.load %arg4[%c1_37, %c0_38, %c0_39] : memref<3x128x128xf32, #tpu.memory_space<vmem>>, vector<1x128x128xf32>
    %75 = vector.shape_cast %74 : vector<1x128x128xf32> to vector<128x128xf32>
    %cst_40 = arith.constant dense<0.000000e+00> : vector<16x128xf32>
    %76 = tpu.matmul %43, %75, %cst_40 {dimension_numbers = #tpu.dot_dimension_numbers<[1], [0], [0], [1], [0, 0, 1, 1], [], []>} : vector<16x128xf32>, vector<128x128xf32>, vector<16x128xf32> -> vector<16x128xf32>
    %77 = arith.addf %73, %76 : vector<16x128xf32>
    %c2_41 = arith.constant 2 : index
    %c0_42 = arith.constant 0 : index
    %c0_43 = arith.constant 0 : index
    %78 = vector.load %arg4[%c2_41, %c0_42, %c0_43] : memref<3x128x128xf32, #tpu.memory_space<vmem>>, vector<1x128x128xf32>
    %79 = vector.shape_cast %78 : vector<1x128x128xf32> to vector<128x128xf32>
    %cst_44 = arith.constant dense<0.000000e+00> : vector<16x128xf32>
    %80 = tpu.matmul %70, %79, %cst_44 {dimension_numbers = #tpu.dot_dimension_numbers<[1], [0], [0], [1], [0, 0, 1, 1], [], []>} : vector<16x128xf32>, vector<128x128xf32>, vector<16x128xf32> -> vector<16x128xf32>
    %81 = arith.addf %77, %80 : vector<16x128xf32>
    %c0_45 = arith.constant 0 : index
    %c0_46 = arith.constant 0 : index
    %82 = vector.load %arg5[%c0_45, %c0_46] : memref<1x128xf32, #tpu.memory_space<vmem>>, vector<1x128xf32>
    %83 = vector.broadcast %82 : vector<1x128xf32> to vector<16x128xf32>
    %84 = arith.addf %81, %83 : vector<16x128xf32>
    %85 = arith.addf %84, %0 : vector<16x128xf32>
    %cst_47 = arith.constant 0.000000e+00 : f32
    %86 = vector.broadcast %cst_47 : f32 to vector<16x128xf32>
    %87 = arith.maximumf %85, %86 : vector<16x128xf32>
    %c0_48 = arith.constant 0 : index
    %c0_49 = arith.constant 0 : index
    %88 = vector.load %arg6[%c0_48, %c0_49] : memref<16x128xf32, #tpu.memory_space<vmem>>, vector<16x128xf32>
    tpu.vector_store %arg6[%c0_48, %c0_49], %87 {strides = array<i32>} : memref<16x128xf32, #tpu.memory_space<vmem>>, vector<16x128xf32>,
    return
  }
  func.func @transform_0(%arg0: i32) -> (i32, i32) {
    %c0_i32 = arith.constant 0 : i32
    %c0_i32_0 = arith.constant 0 : i32
    return %arg0, %c0_i32 : i32, i32
  }
  func.func @transform_1(%arg0: i32) -> (i32, i32, i32) {
    %c0_i32 = arith.constant 0 : i32
    %c0_i32_0 = arith.constant 0 : i32
    %c0_i32_1 = arith.constant 0 : i32
    %c0_i32_2 = arith.constant 0 : i32
    return %c0_i32, %c0_i32_0, %c0_i32_1 : i32, i32, i32
  }
  func.func @transform_2(%arg0: i32) -> (i32, i32) {
    %c0_i32 = arith.constant 0 : i32
    %c0_i32_0 = arith.constant 0 : i32
    %c0_i32_1 = arith.constant 0 : i32
    return %c0_i32, %c0_i32_0 : i32, i32
  }
  func.func @transform_3(%arg0: i32) -> (i32, i32, i32) {
    %c0_i32 = arith.constant 0 : i32
    %c0_i32_0 = arith.constant 0 : i32
    %c0_i32_1 = arith.constant 0 : i32
    %c0_i32_2 = arith.constant 0 : i32
    return %c0_i32, %c0_i32_0, %c0_i32_1 : i32, i32, i32
  }
  func.func @transform_4(%arg0: i32) -> (i32, i32) {
    %c0_i32 = arith.constant 0 : i32
    %c0_i32_0 = arith.constant 0 : i32
    %c0_i32_1 = arith.constant 0 : i32
    return %c0_i32, %c0_i32_0 : i32, i32
  }
  func.func @transform_5(%arg0: i32) -> (i32, i32) {
    %c0_i32 = arith.constant 0 : i32
    %c0_i32_0 = arith.constant 0 : i32
    return %arg0, %c0_i32 : i32, i32
  }
}

</mosaic_0001>

<bundles_post_ra>
// kernel: tile.13
= control target key start
LH: loop header
LB: loop body
LE: loop exit
PB: predicated region body
PF: predicated region fallthrough
CT: control target
= control target key end

     0   :  { %s28_s0 = inlined_call_operand.vmem [shape: f32[8], index: 0, kind: input, shape index: {}]   ;;  %s29_s1 = inlined_call_operand.vmem [shape: f32[16,8], index: 1, kind: output, shape index: {}]  }
   0x1   :  { %v4_v0 = vld [vmem:[%s28_s0] ss:$0 sm:$0xff] }
   0x2   :  { %5 = vst [vmem:[%s29_s1] sm:$0xff] %v4_v0  ;;  %8 = vst [vmem:[%s29_s1 + $0x8] sm:$0xff] %v4_v0 }

// kernel: tile.14
= control target key start
LH: loop header
LB: loop body
LE: loop exit
PB: predicated region body
PF: predicated region fallthrough
CT: control target
= control target key end

     0   :  { %s133_s10 = smov 120   ;;  %s134_s11 = smov 104   ;;  %vm3_vm0 = vcmask 64512   ;;  %vm9_vm1 = vcmask 1048512   ;;  %vm15_vm2 = vcmask 982912   ;;  %vm21_vm3 = vcmask 917312   ;;  %s209_s0 = inlined_call_operand.vmem [shape: f32[16,8], index: 0, kind: input, shape index: {}]   ;;  %s210_s1 = inlined_call_operand.vmem [shape: f32[1,128], index: 1, kind: output, shape index: {}]  }
   0x1   :  { %v103_v0 = vld [vmem:[%s209_s0 + $0xf] sm:$0x1]   ;;  %v105_v1 = vld [vmem:[%s209_s0 + $0xd] sm:$0x1]   ;;  %v104_v2 = vld [vmem:[%s209_s0 + $0xe] sm:$0x1]  }
   0x2   :  { %7 = vrot.lane.b32.xlu0 %v103_v0, %s133_s10  ;;  %19 = vrot.lane.b32.xlu1 %v105_v1, %s134_s11  ;;  %v106_v3 = vld [vmem:[%s209_s0 + $0xc] sm:$0x1]   ;;  %s135_s16 = smov 112   ;;  %s136_s17 = smov 96   ;;  %v107_v4 = vld [vmem:[%s209_s0 + $0xb] sm:$0x1]  }
   0x3   :  { %v108_v5 = vld [vmem:[%s209_s0 + $0xa] sm:$0x1]   ;;  %v2_v6 = vld [vmem:[%s209_s0] sm:$0x1]   ;;  %s137_s24 = smov 88   ;;  %s138_s25 = smov 80  }
   0x4   :  { %4 = vst.msk [vmem:[#allocation0] sm:$0x1] %vm3_vm0, %v2_v6   ;;  %v109_v7 = vld [vmem:[%s209_s0 + $0x9] sm:$0x1]   ;;  %v110_v8 = vld [vmem:[%s209_s0 + $0x8] sm:$0x1]  }
   0x5   :  { %s139_s30 = smov 72   ;;  %s140_s2 = smov 64   ;;  %v111_v9 = vld [vmem:[%s209_s0 + $0x7] sm:$0x1]   ;;  %v112_v10 = vld [vmem:[%s209_s0 + $0x6] sm:$0x1]  }
   0x6   :  { %13 = vrot.lane.b32.xlu0 %v104_v2, %s135_s16  ;;  %25 = vrot.lane.b32.xlu1 %v106_v3, %s136_s17  ;;  %s141_s7 = smov 56   ;;  %s142_s8 = smov 48   ;;  %v113_v11 = vld [vmem:[%s209_s0 + $0x5] sm:$0x1]   ;;  %v114_v12 = vld [vmem:[%s209_s0 + $0x4] sm:$0x1]  }
   0x7   :  { %s143_s13 = smov 40   ;;  %s144_s14 = smov 32   ;;  %v115_v13 = vld [vmem:[%s209_s0 + $0x3] sm:$0x1]   ;;  %v116_v14 = vld [vmem:[%s209_s0 + $0x2] sm:$0x1]  }
   0x8   :  { %s145_s19 = smov 24   ;;  %s146_s20 = smov 16   ;;  %v117_v15 = vld [vmem:[%s209_s0 + $0x1] sm:$0x1]   ;;  %vm27_vm4 = vcmask 851712   ;;  %vm33_vm5 = vcmask 786112  }
   0x9   :  { %s147_s0 = smov 8   ;;  %vm39_vm6 = vcmask 720512   ;;  %vm45_vm7 = vcmask 654912   ;;  %vm51_vm8 = vcmask 589312   ;;  %vm57_vm9 = vcmask 523712  }
   0xa   :  { %31 = vrot.lane.b32.xlu0 %v107_v4, %s137_s24  ;;  %37 = vrot.lane.b32.xlu1 %v108_v5, %s138_s25  ;;  %vm63_vm10 = vcmask 458112   ;;  %vm69_vm11 = vcmask 392512   ;;  %vm75_vm12 = vcmask 326912   ;;  %vm81_vm13 = vcmask 261312  }
   0xb   :  { %vm87_vm14 = vcmask 195712   ;;  %vm93_vm15 = vcmask 130112  }
   0xe   :  { %43 = vrot.lane.b32.xlu0 %v109_v7, %s139_s30  ;;  %49 = vrot.lane.b32.xlu1 %v110_v8, %s140_s2 }
  0x12   :  { %55 = vrot.lane.b32.xlu0 %v111_v9, %s141_s7  ;;  %61 = vrot.lane.b32.xlu1 %v112_v10, %s142_s8 }
  0x16   :  { %67 = vrot.lane.b32.xlu0 %v113_v11, %s143_s13  ;;  %73 = vrot.lane.b32.xlu1 %v114_v12, %s144_s14 }
  0x1a   :  { %79 = vrot.lane.b32.xlu0 %v115_v13, %s145_s19  ;;  %85 = vrot.lane.b32.xlu1 %v116_v14, %s146_s20 }
  0x1e   :  { %91 = vrot.lane.b32.xlu0 %v117_v15, %s147_s0 }
  0x74   :  { %v8_v16 = vpop.permute.xlu0 %7   ;;  %v20_v17 = vpop.permute.xlu1 %19  }
  0x75   :  { %10 = vst.msk [vmem:[#allocation0] sm:$0x1] %vm9_vm1, %v8_v16  }
  0x78   :  { %v14_v18 = vpop.permute.xlu0 %13   ;;  %v26_v19 = vpop.permute.xlu1 %25  }
  0x79   :  { %16 = vst.msk [vmem:[#allocation0] sm:$0x1] %vm15_vm2, %v14_v18  }
  0x7a   :  { %22 = vst.msk [vmem:[#allocation0] sm:$0x1] %vm21_vm3, %v20_v17  }
  0x7b   :  { %28 = vst.msk [vmem:[#allocation0] sm:$0x1] %vm27_vm4, %v26_v19  }
  0x7c   :  { %v32_v20 = vpop.permute.xlu0 %31   ;;  %v38_v21 = vpop.permute.xlu1 %37  }
  0x7d   :  { %34 = vst.msk [vmem:[#allocation0] sm:$0x1] %vm33_vm5, %v32_v20  }
  0x7e   :  { %40 = vst.msk [vmem:[#allocation0] sm:$0x1] %vm39_vm6, %v38_v21  }
  0x80   :  { %v44_v22 = vpop.permute.xlu0 %43   ;;  %v50_v23 = vpop.permute.xlu1 %49  }
  0x81   :  { %46 = vst.msk [vmem:[#allocation0] sm:$0x1] %vm45_vm7, %v44_v22  }
  0x82   :  { %52 = vst.msk [vmem:[#allocation0] sm:$0x1] %vm51_vm8, %v50_v23  }
  0x84   :  { %v56_v24 = vpop.permute.xlu0 %55   ;;  %v62_v25 = vpop.permute.xlu1 %61  }
  0x85   :  { %58 = vst.msk [vmem:[#allocation0] sm:$0x1] %vm57_vm9, %v56_v24  }
  0x86   :  { %64 = vst.msk [vmem:[#allocation0] sm:$0x1] %vm63_vm10, %v62_v25  }
  0x88   :  { %v68_v26 = vpop.permute.xlu0 %67   ;;  %v74_v27 = vpop.permute.xlu1 %73  }
  0x89   :  { %70 = vst.msk [vmem:[#allocation0] sm:$0x1] %vm69_vm11, %v68_v26  }
  0x8a   :  { %76 = vst.msk [vmem:[#allocation0] sm:$0x1] %vm75_vm12, %v74_v27  }
  0x8c   :  { %v80_v28 = vpop.permute.xlu0 %79   ;;  %v86_v29 = vpop.permute.xlu1 %85  }
  0x8d   :  { %82 = vst.msk [vmem:[#allocation0] sm:$0x1] %vm81_vm13, %v80_v28  }
  0x8e   :  { %88 = vst.msk [vmem:[#allocation0] sm:$0x1] %vm87_vm14, %v86_v29  }
  0x90   :  { %v92_v30 = vpop.permute.xlu0 %91  }
  0x91   :  { %94 = vst.msk [vmem:[#allocation0] sm:$0x1] %vm93_vm15, %v92_v30  }
  0x98   :  { %v99_v31 = vld [vmem:[#allocation0] sm:$0x1] }
  0x99   :  { %102 = vst [vmem:[%s210_s1] sm:$0x1] %v99_v31 }

// kernel: basic_block_forward.1
= control target key start
LH: loop header
LB: loop body
LE: loop exit
PB: predicated region body
PF: predicated region fallthrough
CT: control target
= control target key end

     0   :  { %s1374_s18 = smov 0   ;;  %s1755_s0 = inlined_call_operand.vmem [shape: f32[32,128], index: 0, kind: input, shape index: {}]   ;;  %s1756_s1 = inlined_call_operand.vmem [shape: f32[3,128,128], index: 1, kind: input, shape index: {}]   ;;  %s1757_s2 = inlined_call_operand.vmem [shape: f32[1,128], index: 2, kind: input, shape index: {}]   ;;  %s1758_s3 = inlined_call_operand.vmem [shape: f32[3,128,128], index: 3, kind: input, shape index: {}]   ;;  %s1759_s4 = inlined_call_operand.vmem [shape: f32[1,128], index: 4, kind: input, shape index: {}]   ;;  %s1760_s5 = inlined_call_operand.vmem [shape: f32[32,128], index: 5, kind: output, shape index: {}]  }
   0x1 LB: > { %s923_s19 = sadd.s32 4294967295, %s1342_s18   ;;  %p927_p0 = scmp.ge.s32.totalorder %s1342_s18, 1  ;;  %s1342_s18 = sphi %s1374_s18, %s15_s18  }
   0x2   : > { %p188_p1 = scmp.lt.s32.totalorder %s1342_s18, 3 }
   0x4   : > { %p189_p2 = pnand %p927_p0, %p188_p1 }
   0x5   : > { %s928_s15 = sshll.u32 (!%p189_p2), %s923_s19, 1 }
   0x6   : > { %192 = sbr.rel (%p189_p2) target bundleno = 516 (0x204), region = 40  ;;  %p217_p3 = scmp.lt.s32.totalorder (!%p189_p2), %s928_s15, 3 }
   0xb   : > { %v947_v0 = vld [vmem:[%s1756_s1 + $0xf8] sm:$0xff]  ;;  %v946_v2 = vld [vmem:[%s1756_s1 + $0xf0] sm:$0xff]  ;;  %v945_v4 = vld [vmem:[%s1756_s1 + $0xe8] sm:$0xff]  ;;  %s1766_s15 = smov (!%p217_p3, %s928_s15), 3  ;;  %v230_v22 = vlaneseq }
   0xc   : > { %v290_v1 = vld [vmem:[%s1756_s1 + $0x78] sm:$0xff]  ;;  %1118 = vmatprep.subr.mxu0 %v947_v0  ;;  %v289_v3 = vld [vmem:[%s1756_s1 + $0x70] sm:$0xff]  ;;  %v288_v5 = vld [vmem:[%s1756_s1 + $0x68] sm:$0xff]  ;;  %s929_s12 = sshll.u32 %s1766_s15, 3 }
   0xd   : > { %1153 = vmatprep.subr.mxu1 %v290_v1  ;;  %1119 = vmatpush3.msra.mxu0 %v947_v0  ;;  %v944_v6 = vld [vmem:[%s1756_s1 + $0xe0] sm:$0xff]  ;;  %v943_v8 = vld [vmem:[%s1756_s1 + $0xd8] sm:$0xff]  ;;  %v942_v10 = vld [vmem:[%s1756_s1 + $0xd0] sm:$0xff]  ;;  %s220_s25 = scalar_lea.vmem %s1755_s0, %s929_s12  ;;  %v1468_v27 = vshrl.u32 %v230_v22, 7  ;;  %s226_s23 = scalar_lea.vmem %s1760_s5, %s929_s12 }
   0xe   : > { %1154 = vmatpush3.msra.mxu1 %v290_v1  ;;  %1120 = vmatprep.subr.mxu0 %v946_v2  ;;  %v287_v7 = vld [vmem:[%s1756_s1 + $0x60] sm:$0xff]  ;;  %v286_v9 = vld [vmem:[%s1756_s1 + $0x58] sm:$0xff]  ;;  %v285_v11 = vld [vmem:[%s1756_s1 + $0x50] sm:$0xff] }
   0xf   : > { %1155 = vmatprep.subr.mxu1 %v289_v3  ;;  %1121 = vmatpush3.msra.mxu0 %v946_v2  ;;  %v941_v12 = vld [vmem:[%s1756_s1 + $0xc8] sm:$0xff]  ;;  %v940_v14 = vld [vmem:[%s1756_s1 + $0xc0] sm:$0xff]  ;;  %v939_v16 = vld [vmem:[%s1756_s1 + $0xb8] sm:$0xff]  ;;  %v237_v34 = vand.u32 15, %v1468_v27  ;;  %vm261_vm0 = vcmp.lt.s32.totalorder %v1468_v27, 1  ;;  %vm270_vm1 = vcmp.lt.s32.totalorder %v1468_v27, 7 }
  0x10   : > { %1156 = vmatpush3.msra.mxu1 %v289_v3  ;;  %1122 = vmatprep.subr.mxu0 %v945_v4  ;;  %v284_v13 = vld [vmem:[%s1756_s1 + $0x48] sm:$0xff]  ;;  %v283_v15 = vld [vmem:[%s1756_s1 + $0x40] sm:$0xff]  ;;  %v282_v17 = vld [vmem:[%s1756_s1 + $0x38] sm:$0xff]  ;;  %v232_v58 = vadd.s32 8, %v1468_v27 }
  0x11   : > { %1157 = vmatprep.subr.mxu1 %v288_v5  ;;  %1123 = vmatpush3.msra.mxu0 %v945_v4  ;;  %v938_v18 = vld [vmem:[%s1756_s1 + $0xb0] sm:$0xff]  ;;  %v937_v20 = vld [vmem:[%s1756_s1 + $0xa8] sm:$0xff]  ;;  %v936_v23 = vld [vmem:[%s1756_s1 + $0xa0] sm:$0xff]  ;;  %vm1501_vm2 = vcmp.ne.s32.totalorder %v237_v34, 0 }
  0x12   : > { %1158 = vmatpush3.msra.mxu1 %v288_v5  ;;  %1124 = vmatprep.subr.mxu0 %v944_v6  ;;  %v281_v19 = vld [vmem:[%s1756_s1 + $0x30] sm:$0xff]  ;;  %v280_v21 = vld [vmem:[%s1756_s1 + $0x28] sm:$0xff]  ;;  %v279_v24 = vld [vmem:[%s1756_s1 + $0x20] sm:$0xff]  ;;  %v244_v61 = vand.u32 15, %v232_v58 }
  0x13   : > { %1159 = vmatprep.subr.mxu1 %v287_v7  ;;  %1125 = vmatpush3.msra.mxu0 %v944_v6  ;;  %v935_v25 = vld [vmem:[%s1756_s1 + $0x98] sm:$0xff]  ;;  %v1470_v28 = vld [vmem:[%s220_s25] sm:$0xff]  ;;  %v1472_v29 = vld [vmem:[%s220_s25 + $0x8] sm:$0xff] }
  0x14   : > { %1160 = vmatpush3.msra.mxu1 %v287_v7  ;;  %1126 = vmatprep.subr.mxu0 %v943_v8  ;;  %v278_v26 = vld [vmem:[%s1756_s1 + $0x18] sm:$0xff]  ;;  %v934_v30 = vld [vmem:[%s1756_s1 + $0x90] sm:$0xff]  ;;  %v933_v32 = vld [vmem:[%s1756_s1 + $0x88] sm:$0xff]  ;;  %v259_v35 = vrot.slane %v1470_v28, 7  ;;  %v260_v36 = vrot.slane %v1472_v29, 7  ;;  %v268_v39 = vrot.slane %v1470_v28, 1 }
  0x15   : > { %1161 = vmatprep.subr.mxu1 %v286_v9  ;;  %1127 = vmatpush3.msra.mxu0 %v943_v8  ;;  %v277_v31 = vld [vmem:[%s1756_s1 + $0x10] sm:$0xff]  ;;  %v276_v33 = vld [vmem:[%s1756_s1 + $0x8] sm:$0xff]  ;;  %v932_v37 = vld [vmem:[%s1756_s1 + $0x80] sm:$0xff]  ;;  %v269_v40 = vrot.slane %v1472_v29, 1  ;;  %vm1572_vm3 = vcmp.ne.s32.totalorder %v244_v61, 15 }
  0x16   : > { %1162 = vmatpush3.msra.mxu1 %v286_v9  ;;  %1128 = vmatprep.subr.mxu0 %v942_v10  ;;  %v275_v38 = vld [vmem:[%s1756_s1] sm:$0xff]  ;;  %v263_v41 = vsel %vm261_vm0, %v260_v36, %v259_v35  ;;  %v262_v43 = vsel %vm261_vm0, %v259_v35, %v260_v36  ;;  %v965_v44 = vld [vmem:[%s1756_s1 + $0x178] sm:$0xff]  ;;  %v964_v46 = vld [vmem:[%s1756_s1 + $0x170] sm:$0xff] }
  0x17   : > { %1163 = vmatprep.subr.mxu1 %v285_v11  ;;  %1129 = vmatpush3.msra.mxu0 %v942_v10  ;;  %v271_v45 = vsel %vm270_vm1, %v268_v39, %v269_v40  ;;  %v963_v47 = vld [vmem:[%s1756_s1 + $0x168] sm:$0xff]  ;;  %v962_v48 = vld [vmem:[%s1756_s1 + $0x160] sm:$0xff]  ;;  %v961_v49 = vld [vmem:[%s1756_s1 + $0x158] sm:$0xff]  ;;  %v272_v63 = vsel %vm270_vm1, %v269_v40, %v268_v39 }
  0x18   : > { %1164 = vmatpush3.msra.mxu1 %v285_v11  ;;  %1130 = vmatprep.subr.mxu0 %v941_v12  ;;  %v960_v50 = vld [vmem:[%s1756_s1 + $0x150] sm:$0xff]  ;;  %v959_v51 = vld [vmem:[%s1756_s1 + $0x148] sm:$0xff]  ;;  %v958_v52 = vld [vmem:[%s1756_s1 + $0x140] sm:$0xff] }
  0x19   : > { %1165 = vmatprep.subr.mxu1 %v284_v13  ;;  %1131 = vmatpush3.msra.mxu0 %v941_v12  ;;  %v957_v53 = vld [vmem:[%s1756_s1 + $0x138] sm:$0xff]  ;;  %v956_v54 = vld [vmem:[%s1756_s1 + $0x130] sm:$0xff]  ;;  %v955_v55 = vld [vmem:[%s1756_s1 + $0x128] sm:$0xff] }
  0x1a   : > { %1166 = vmatpush3.msra.mxu1 %v284_v13  ;;  %1132 = vmatprep.subr.mxu0 %v940_v14  ;;  %v954_v56 = vld [vmem:[%s1756_s1 + $0x120] sm:$0xff]  ;;  %v953_v57 = vld [vmem:[%s1756_s1 + $0x118] sm:$0xff]  ;;  %v952_v59 = vld [vmem:[%s1756_s1 + $0x110] sm:$0xff] }
  0x1b   : > { %1167 = vmatprep.subr.mxu1 %v283_v15  ;;  %1133 = vmatpush3.msra.mxu0 %v940_v14  ;;  %v951_v60 = vld [vmem:[%s1756_s1 + $0x108] sm:$0xff]  ;;  %v950_v62 = vld [vmem:[%s1756_s1 + $0x100] sm:$0xff]  ;;  %v984_v1 = vld [vmem:[%s1758_s3 + $0xf8] sm:$0xff] }
  0x1c   : > { %1168 = vmatpush3.msra.mxu1 %v283_v15  ;;  %1134 = vmatprep.subr.mxu0 %v939_v16  ;;  %v983_v2 = vld [vmem:[%s1758_s3 + $0xf0] sm:$0xff]  ;;  %v590_v3 = vld [vmem:[%s1758_s3 + $0x78] sm:$0xff]  ;;  %v982_v5 = vld [vmem:[%s1758_s3 + $0xe8] sm:$0xff] }
  0x1d   : > { %1169 = vmatprep.subr.mxu1 %v282_v17  ;;  %1135 = vmatpush3.msra.mxu0 %v939_v16  ;;  %v589_v4 = vld [vmem:[%s1758_s3 + $0x70] sm:$0xff]  ;;  %v588_v6 = vld [vmem:[%s1758_s3 + $0x68] sm:$0xff]  ;;  %v981_v7 = vld [vmem:[%s1758_s3 + $0xe0] sm:$0xff] }
  0x1e   : > { %1170 = vmatpush3.msra.mxu1 %v282_v17  ;;  %1136 = vmatprep.subr.mxu0 %v938_v18  ;;  %v587_v8 = vld [vmem:[%s1758_s3 + $0x60] sm:$0xff]  ;;  %v980_v9 = vld [vmem:[%s1758_s3 + $0xd8] sm:$0xff]  ;;  %v979_v11 = vld [vmem:[%s1758_s3 + $0xd0] sm:$0xff] }
  0x1f   : > { %1171 = vmatprep.subr.mxu1 %v281_v19  ;;  %1137 = vmatpush3.msra.mxu0 %v938_v18  ;;  %v586_v10 = vld [vmem:[%s1758_s3 + $0x58] sm:$0xff]  ;;  %v585_v12 = vld [vmem:[%s1758_s3 + $0x50] sm:$0xff]  ;;  %v978_v13 = vld [vmem:[%s1758_s3 + $0xc8] sm:$0xff] }
  0x20   : > { %1172 = vmatpush3.msra.mxu1 %v281_v19  ;;  %1138 = vmatprep.subr.mxu0 %v937_v20  ;;  %v584_v14 = vld [vmem:[%s1758_s3 + $0x48] sm:$0xff]  ;;  %v977_v15 = vld [vmem:[%s1758_s3 + $0xc0] sm:$0xff]  ;;  %v976_v17 = vld [vmem:[%s1758_s3 + $0xb8] sm:$0xff] }
  0x21   : > { %1173 = vmatprep.subr.mxu1 %v280_v21  ;;  %1139 = vmatpush3.msra.mxu0 %v937_v20  ;;  %v583_v16 = vld [vmem:[%s1758_s3 + $0x40] sm:$0xff]  ;;  %v582_v18 = vld [vmem:[%s1758_s3 + $0x38] sm:$0xff]  ;;  %v975_v19 = vld [vmem:[%s1758_s3 + $0xb0] sm:$0xff] }
  0x22   : > { %1174 = vmatpush3.msra.mxu1 %v280_v21  ;;  %1140 = vmatprep.subr.mxu0 %v936_v23  ;;  %v581_v20 = vld [vmem:[%s1758_s3 + $0x30] sm:$0xff]  ;;  %v974_v21 = vld [vmem:[%s1758_s3 + $0xa8] sm:$0xff]  ;;  %v973_v22 = vld [vmem:[%s1758_s3 + $0xa0] sm:$0xff] }
  0x23   : > { %1175 = vmatprep.subr.mxu1 %v279_v24  ;;  %1141 = vmatpush3.msra.mxu0 %v936_v23  ;;  %v972_v23 = vld [vmem:[%s1758_s3 + $0x98] sm:$0xff]  ;;  %v576_v34 = vld [vmem:[%s1758_s3 + $0x8] sm:$0xff]  ;;  %v575_v36 = vld [vmem:[%s1758_s3] sm:$0xff] }
  0x24   : > { %1176 = vmatpush3.msra.mxu1 %v279_v24  ;;  %1142 = vmatprep.subr.mxu0 %v935_v25  ;;  %v580_v24 = vld [vmem:[%s1758_s3 + $0x28] sm:$0xff]  ;;  %v1002_v35 = vld [vmem:[%s1758_s3 + $0x178] sm:$0xff]  ;;  %v997_v42 = vld [vmem:[%s1758_s3 + $0x150] sm:$0xff] }
  0x25   : > { %1177 = vmatprep.subr.mxu1 %v278_v26  ;;  %1143 = vmatpush3.msra.mxu0 %v935_v25  ;;  %v971_v25 = vld [vmem:[%s1758_s3 + $0x90] sm:$0xff]  ;;  %v1000_v61 = vld [vmem:[%s1758_s3 + $0x168] sm:$0xff] }
  0x26   : > { %1178 = vmatpush3.msra.mxu1 %v278_v26  ;;  %1144 = vmatprep.subr.mxu0 %v934_v30  ;;  %v579_v26 = vld [vmem:[%s1758_s3 + $0x20] sm:$0xff] }
  0x27   : > { %1179 = vmatprep.subr.mxu1 %v277_v31  ;;  %1145 = vmatpush3.msra.mxu0 %v934_v30  ;;  %v970_v30 = vld [vmem:[%s1758_s3 + $0x88] sm:$0xff] }
  0x28   : > { %1180 = vmatpush3.msra.mxu1 %v277_v31  ;;  %1146 = vmatprep.subr.mxu0 %v933_v32  ;;  %v578_v31 = vld [vmem:[%s1758_s3 + $0x18] sm:$0xff] }
  0x29   : > { %1181 = vmatprep.subr.mxu1 %v276_v33  ;;  %1147 = vmatpush3.msra.mxu0 %v933_v32  ;;  %v969_v32 = vld [vmem:[%s1758_s3 + $0x80] sm:$0xff] }
  0x2a   : > { %1182 = vmatpush3.msra.mxu1 %v276_v33  ;;  %1148 = vmatprep.subr.mxu0 %v932_v37  ;;  %v577_v33 = vld [vmem:[%s1758_s3 + $0x10] sm:$0xff] }
  0x2b   : > { %1183 = vmatprep.subr.mxu1 %v275_v38  ;;  %1149 = vmatpush3.msra.mxu0 %v932_v37 }
  0x2c   : > { %1150 = vmatprep.mubr.f32.mxu0 %v1470_v28  ;;  %1184 = vmatpush3.msra.mxu1 %v275_v38 }
  0x2d   : > { %1185 = vmatprep.mubr.msk.f32.mxu1 %vm1501_vm2, %v263_v41  ;;  %1151 = vmatmul.mubr.f32.vlgmr.msra.gmra.mxu0 %v1472_v29 }
  0x2e   : > { %1186 = vmatmul.mubr.f32.vlgmr.msra.gmra.mxu1 %v262_v43  ;;  %1188 = vmatprep.subr.mxu0 %v965_v44 }
  0x2f   : > { %1220 = vmatprep.mubr.f32.mxu0 %v271_v45  ;;  %1189 = vmatpush3.msra.mxu0 %v965_v44  ;;  %v968_v44 = vld [vmem:[%s1757_s2] ss:$0 sm:$0xff] }
  0x30   : > { %1190 = vmatprep.subr.mxu0 %v964_v46  ;;  %1223 = vmatprep.subr.mxu1 %v984_v1 }
  0x31   : > { %1191 = vmatpush3.msra.mxu0 %v964_v46  ;;  %1224 = vmatpush3.msra.mxu1 %v984_v1  ;;  %v996_v1 = vld [vmem:[%s1758_s3 + $0x148] sm:$0xff] }
  0x32   : > { %1192 = vmatprep.subr.mxu0 %v963_v47  ;;  %1225 = vmatprep.subr.mxu1 %v983_v2 }
  0x33   : > { %1193 = vmatpush3.msra.mxu0 %v963_v47  ;;  %1226 = vmatpush3.msra.mxu1 %v983_v2  ;;  %v995_v2 = vld [vmem:[%s1758_s3 + $0x140] sm:$0xff] }
  0x34   : > { %1194 = vmatprep.subr.mxu0 %v962_v48  ;;  %1227 = vmatprep.subr.mxu1 %v982_v5 }
  0x35   : > { %1195 = vmatpush3.msra.mxu0 %v962_v48  ;;  %1228 = vmatpush3.msra.mxu1 %v982_v5  ;;  %v992_v5 = vld [vmem:[%s1758_s3 + $0x128] sm:$0xff] }
  0x36   : > { %1196 = vmatprep.subr.mxu0 %v961_v49  ;;  %1229 = vmatprep.subr.mxu1 %v981_v7 }
  0x37   : > { %1197 = vmatpush3.msra.mxu0 %v961_v49  ;;  %1230 = vmatpush3.msra.mxu1 %v981_v7  ;;  %v990_v7 = vld [vmem:[%s1758_s3 + $0x118] sm:$0xff] }
  0x38   : > { %1198 = vmatprep.subr.mxu0 %v960_v50  ;;  %1231 = vmatprep.subr.mxu1 %v980_v9 }
  0x39   : > { %1199 = vmatpush3.msra.mxu0 %v960_v50  ;;  %1232 = vmatpush3.msra.mxu1 %v980_v9  ;;  %v988_v9 = vld [vmem:[%s1758_s3 + $0x108] sm:$0xff] }
  0x3a   : > { %1200 = vmatprep.subr.mxu0 %v959_v51  ;;  %1233 = vmatprep.subr.mxu1 %v979_v11 }
  0x3b   : > { %1201 = vmatpush3.msra.mxu0 %v959_v51  ;;  %1234 = vmatpush3.msra.mxu1 %v979_v11 }
  0x3c   : > { %1202 = vmatprep.subr.mxu0 %v958_v52  ;;  %1235 = vmatprep.subr.mxu1 %v978_v13 }
  0x3d   : > { %1203 = vmatpush3.msra.mxu0 %v958_v52  ;;  %1236 = vmatpush3.msra.mxu1 %v978_v13 }
  0x3e   : > { %1204 = vmatprep.subr.mxu0 %v957_v53  ;;  %1237 = vmatprep.subr.mxu1 %v977_v15 }
  0x3f   : > { %1205 = vmatpush3.msra.mxu0 %v957_v53  ;;  %1238 = vmatpush3.msra.mxu1 %v977_v15 }
  0x40   : > { %1206 = vmatprep.subr.mxu0 %v956_v54  ;;  %1239 = vmatprep.subr.mxu1 %v976_v17 }
  0x41   : > { %1207 = vmatpush3.msra.mxu0 %v956_v54  ;;  %1240 = vmatpush3.msra.mxu1 %v976_v17 }
  0x42   : > { %1208 = vmatprep.subr.mxu0 %v955_v55  ;;  %1241 = vmatprep.subr.mxu1 %v975_v19 }
  0x43   : > { %1209 = vmatpush3.msra.mxu0 %v955_v55  ;;  %1242 = vmatpush3.msra.mxu1 %v975_v19  ;;  %v1001_v55 = vld [vmem:[%s1758_s3 + $0x170] sm:$0xff] }
  0x44   : > { %1210 = vmatprep.subr.mxu0 %v954_v56  ;;  %1243 = vmatprep.subr.mxu1 %v974_v21 }
  0x45   : > { %1211 = vmatpush3.msra.mxu0 %v954_v56  ;;  %1244 = vmatpush3.msra.mxu1 %v974_v21 }
  0x46   : > { %1212 = vmatprep.subr.mxu0 %v953_v57  ;;  %1245 = vmatprep.subr.mxu1 %v973_v22 }
  0x47   : > { %1213 = vmatpush3.msra.mxu0 %v953_v57  ;;  %1246 = vmatpush3.msra.mxu1 %v973_v22 }
  0x48   : > { %1214 = vmatprep.subr.mxu0 %v952_v59  ;;  %1247 = vmatprep.subr.mxu1 %v972_v23 }
  0x49   : > { %1215 = vmatpush3.msra.mxu0 %v952_v59  ;;  %1248 = vmatpush3.msra.mxu1 %v972_v23 }
  0x4a   : > { %1216 = vmatprep.subr.mxu0 %v951_v60  ;;  %1249 = vmatprep.subr.mxu1 %v971_v25 }
  0x4b   : > { %1217 = vmatpush3.msra.mxu0 %v951_v60  ;;  %1250 = vmatpush3.msra.mxu1 %v971_v25 }
  0x4c   : > { %1218 = vmatprep.subr.mxu0 %v950_v62  ;;  %1251 = vmatprep.subr.mxu1 %v970_v30 }
  0x4d   : > { %1219 = vmatpush3.msra.mxu0 %v950_v62  ;;  %1252 = vmatpush3.msra.mxu1 %v970_v30  ;;  %v999_v62 = vld [vmem:[%s1758_s3 + $0x160] sm:$0xff] }
  0x4e   : > { %1221 = vmatmul.mubr.msk.f32.vlgmr.msra.gmra.mxu0 %vm1572_vm3, %v272_v63  ;;  %1258 = vmatprep.subr.mxu0 %v590_v3  ;;  %v998_v63 = vld [vmem:[%s1758_s3 + $0x158] sm:$0xff] }
  0x4f   : > { %1259 = vmatpush3.msra.mxu0 %v590_v3  ;;  %1253 = vmatprep.subr.mxu1 %v969_v32  ;;  %v994_v3 = vld [vmem:[%s1758_s3 + $0x138] sm:$0xff] }
  0x50   : > { %1260 = vmatprep.subr.mxu0 %v589_v4  ;;  %1254 = vmatpush3.msra.mxu1 %v969_v32 }
  0x51   : > { %1261 = vmatpush3.msra.mxu0 %v589_v4  ;;  %1293 = vmatprep.subr.mxu1 %v1002_v35  ;;  %v993_v4 = vld [vmem:[%s1758_s3 + $0x130] sm:$0xff] }
  0x52   : > { %1262 = vmatprep.subr.mxu0 %v588_v6 }
  0x53   : > { %1263 = vmatpush3.msra.mxu0 %v588_v6  ;;  %v991_v6 = vld [vmem:[%s1758_s3 + $0x120] sm:$0xff] }
  0x54   : > { %1264 = vmatprep.subr.mxu0 %v587_v8 }
  0x55   : > { %1265 = vmatpush3.msra.mxu0 %v587_v8  ;;  %v989_v8 = vld [vmem:[%s1758_s3 + $0x110] sm:$0xff] }
  0x56   : > { %1266 = vmatprep.subr.mxu0 %v586_v10 }
  0x57   : > { %1267 = vmatpush3.msra.mxu0 %v586_v10  ;;  %v987_v10 = vld [vmem:[%s1758_s3 + $0x100] sm:$0xff] }
  0x58   : > { %1268 = vmatprep.subr.mxu0 %v585_v12 }
  0x59   : > { %1269 = vmatpush3.msra.mxu0 %v585_v12 }
  0x5a   : > { %1270 = vmatprep.subr.mxu0 %v584_v14 }
  0x5b   : > { %1271 = vmatpush3.msra.mxu0 %v584_v14 }
  0x5c   : > { %1272 = vmatprep.subr.mxu0 %v583_v16 }
  0x5d   : > { %1273 = vmatpush3.msra.mxu0 %v583_v16 }
  0x5e   : > { %1274 = vmatprep.subr.mxu0 %v582_v18 }
  0x5f   : > { %1275 = vmatpush3.msra.mxu0 %v582_v18  ;;  %v1005_v18 = vld [vmem:[%s1759_s4] ss:$0 sm:$0xff] }
  0x60   : > { %1276 = vmatprep.subr.mxu0 %v581_v20 }
  0x61   : > { %1277 = vmatpush3.msra.mxu0 %v581_v20 }
  0x62   : > { %1278 = vmatprep.subr.mxu0 %v580_v24 }
  0x63   : > { %1279 = vmatpush3.msra.mxu0 %v580_v24 }
  0x64   : > { %1280 = vmatprep.subr.mxu0 %v579_v26 }
  0x65   : > { %1281 = vmatpush3.msra.mxu0 %v579_v26 }
  0x66   : > { %1282 = vmatprep.subr.mxu0 %v578_v31 }
  0x67   : > { %1283 = vmatpush3.msra.mxu0 %v578_v31 }
  0x68   : > { %1284 = vmatprep.subr.mxu0 %v577_v33 }
  0x69   : > { %1285 = vmatpush3.msra.mxu0 %v577_v33 }
  0x6a   : > { %1286 = vmatprep.subr.mxu0 %v576_v34 }
  0x6b   : > { %1287 = vmatpush3.msra.mxu0 %v576_v34 }
  0x6c   : > { %1288 = vmatprep.subr.mxu0 %v575_v36 }
  0x6d   : > { %1289 = vmatpush3.msra.mxu0 %v575_v36 }
  0xed   : > { %v1152_v37 = vpop.f32.mrf.mxu0 }
  0xee   : > { %v1187_v38 = vpop.f32.mrf.mxu1 }
  0xef   : > { %v374_v39 = vpop.f32.mrf.mxu0  ;;  %v455_v41 = vadd.f32 %v1187_v38, %v1152_v37 }
  0xf0   : > { %v449_v40 = vpop.f32.mrf.mxu1 }
  0xf1   : > { %v450_v45 = vadd.f32 %v449_v40, %v374_v39 }
 0x10e   : > { %v1222_v43 = vpop.f32.mrf.mxu0 }
 0x10f   : > { %v551_v46 = vadd.f32 %v1222_v43, %v455_v41 }
 0x110   : > { %v541_v47 = vpop.f32.mrf.mxu0 }
 0x111   : > { %v560_v48 = vadd.f32 %v968_v44, %v551_v46  ;;  %v550_v49 = vadd.f32 %v541_v47, %v450_v45 }
 0x113   : > { %v1680_v50 = vmax.f32 %v560_v48, 0.0  ;;  %v559_v51 = vadd.f32 %v968_v44, %v550_v49 }
 0x115   : > { %v561_v52 = vmax.f32 %v559_v51, 0.0  ;;  %v564_v53 = vrot.slane %v1680_v50, 7  ;;  %v570_v57 = vrot.slane %v1680_v50, 1 }
 0x117   : > { %v563_v54 = vrot.slane %v561_v52, 7  ;;  %1255 = vmatprep.mubr.f32.mxu1 %v561_v52  ;;  %v569_v56 = vrot.slane %v561_v52, 1 }
 0x118   : > { %1256 = vmatmul.mubr.f32.vlgmr.msra.gmra.mxu1 %v1680_v50 }
 0x119   : > { %1294 = vmatpush3.msra.mxu1 %v1002_v35  ;;  %v566_v58 = vsel %vm261_vm0, %v564_v53, %v563_v54  ;;  %v571_v59 = vsel %vm270_vm1, %v569_v56, %v570_v57  ;;  %v565_v60 = vsel %vm261_vm0, %v563_v54, %v564_v53  ;;  %v572_v11 = vsel %vm270_vm1, %v570_v57, %v569_v56 }
 0x11a   : > { %1295 = vmatprep.subr.mxu1 %v1001_v55  ;;  %1290 = vmatprep.mubr.msk.f32.mxu0 %vm1501_vm2, %v566_v58 }
 0x11b   : > { %1296 = vmatpush3.msra.mxu1 %v1001_v55  ;;  %1325 = vmatprep.mubr.f32.mxu1 %v571_v59 }
 0x11c   : > { %1291 = vmatmul.mubr.f32.vlgmr.msra.gmra.mxu0 %v565_v60  ;;  %1297 = vmatprep.subr.mxu1 %v1000_v61 }
 0x11d   : > { %1298 = vmatpush3.msra.mxu1 %v1000_v61 }
 0x11e   : > { %1299 = vmatprep.subr.mxu1 %v999_v62 }
 0x11f   : > { %1300 = vmatpush3.msra.mxu1 %v999_v62 }
 0x120   : > { %1301 = vmatprep.subr.mxu1 %v998_v63 }
 0x121   : > { %1302 = vmatpush3.msra.mxu1 %v998_v63 }
 0x122   : > { %1303 = vmatprep.subr.mxu1 %v997_v42 }
 0x123   : > { %1304 = vmatpush3.msra.mxu1 %v997_v42 }
 0x124   : > { %1305 = vmatprep.subr.mxu1 %v996_v1 }
 0x125   : > { %1306 = vmatpush3.msra.mxu1 %v996_v1 }
 0x126   : > { %1307 = vmatprep.subr.mxu1 %v995_v2 }
 0x127   : > { %1308 = vmatpush3.msra.mxu1 %v995_v2 }
 0x128   : > { %1309 = vmatprep.subr.mxu1 %v994_v3 }
 0x129   : > { %1310 = vmatpush3.msra.mxu1 %v994_v3 }
 0x12a   : > { %1311 = vmatprep.subr.mxu1 %v993_v4 }
 0x12b   : > { %1312 = vmatpush3.msra.mxu1 %v993_v4 }
 0x12c   : > { %1313 = vmatprep.subr.mxu1 %v992_v5 }
 0x12d   : > { %1314 = vmatpush3.msra.mxu1 %v992_v5 }
 0x12e   : > { %1315 = vmatprep.subr.mxu1 %v991_v6 }
 0x12f   : > { %1316 = vmatpush3.msra.mxu1 %v991_v6 }
 0x130   : > { %1317 = vmatprep.subr.mxu1 %v990_v7 }
 0x131   : > { %1318 = vmatpush3.msra.mxu1 %v990_v7 }
 0x132   : > { %1319 = vmatprep.subr.mxu1 %v989_v8 }
 0x133   : > { %1320 = vmatpush3.msra.mxu1 %v989_v8 }
 0x134   : > { %1321 = vmatprep.subr.mxu1 %v988_v9 }
 0x135   : > { %1322 = vmatpush3.msra.mxu1 %v988_v9 }
 0x136   : > { %1323 = vmatprep.subr.mxu1 %v987_v10 }
 0x137   : > { %1324 = vmatpush3.msra.mxu1 %v987_v10 }
 0x138   : > { %1326 = vmatmul.mubr.msk.f32.vlgmr.msra.gmra.mxu1 %vm1572_vm3, %v572_v11 }
 0x1d8   : > { %v1257_v12 = vpop.f32.mrf.mxu1 }
 0x1da   : > { %v674_v14 = vpop.f32.mrf.mxu1 }
 0x1dc   : > { %v1292_v13 = vpop.f32.mrf.mxu0 }
 0x1dd   : > { %v755_v16 = vadd.f32 %v1292_v13, %v1257_v12 }
 0x1de   : > { %v749_v15 = vpop.f32.mrf.mxu0 }
 0x1df   : > { %v750_v19 = vadd.f32 %v749_v15, %v674_v14 }
 0x1f8   : > { %v1327_v17 = vpop.f32.mrf.mxu1 }
 0x1f9   : > { %v851_v20 = vadd.f32 %v1327_v17, %v755_v16 }
 0x1fa   : > { %v841_v21 = vpop.f32.mrf.mxu1 }
 0x1fb   : > { %v860_v22 = vadd.f32 %v1005_v18, %v851_v20  ;;  %v850_v27 = vadd.f32 %v841_v21, %v750_v19 }
 0x1fd   : > { %v859_v23 = vadd.f32 %v1005_v18, %v850_v27  ;;  %v862_v0 = vadd.f32 %v860_v22, %v1472_v29 }
 0x1ff   : > { %v861_v24 = vadd.f32 %v859_v23, %v1470_v28  ;;  %v864_v26 = vmax.f32 %v862_v0, 0.0 }
 0x201   : > { %v863_v25 = vmax.f32 %v861_v24, 0.0  ;;  %866 = vst [vmem:[%s226_s23 + $0x8] sm:$0xff] %v864_v26 }
 0x203   : > { %865 = vst [vmem:[%s226_s23] sm:$0xff] %v863_v25 }
 0x204 PF: > { %s15_s18 = sadd.s32 1, %s1342_s18  }
 0x205   : > { %p12_p4 = scmp.ge.s32.totalorder %s15_s18, 4  }
 0x207   :  { %14 = sbr.rel (!%p12_p4) target bundleno = 1 (0x1), region = 74 }

</bundles_post_ra>
